<compile_context>
chip_gen: v7x
topology: tpu7x:2x2x1
jax: 0.10.0
libtpu: 0.0.40
codegen_flags: <defaults>
</compile_context>

<pallas_src>
import functools

import jax
import jax.numpy as jnp
from jax.experimental import pallas as pl
from jax.experimental.pallas import tpu as pltpu

EPS = 1e-5
MOMENTUM = 0.00029999999999996696  # matches the PyTorch module


def _bn_fused_kernel(x_ref, gamma_ref, beta_ref, y_ref, mean_ref, var_ref,
                     *, inv_count, eps):
    """Fused BN: stats + normalize on one channel tile in a single pass."""
    x = x_ref[...].astype(jnp.float32)                 # (N, c_tile, HW)

    # Lane (spatial) reduction on the XLU, then fold the batch axis.
    s = jnp.sum(x, axis=2, keepdims=True)              # (N, c_tile, 1)
    sq = jnp.sum(x * x, axis=2, keepdims=True)         # (N, c_tile, 1)
    s = jnp.sum(s, axis=0, keepdims=True)              # (1, c_tile, 1)
    sq = jnp.sum(sq, axis=0, keepdims=True)            # (1, c_tile, 1)

    mean = s * jnp.float32(inv_count)
    # Biased variance, clamped against E[x^2] - mean^2 cancellation.
    var = jnp.maximum(sq * jnp.float32(inv_count) - mean * mean, 0.0)
    inv_std = jax.lax.rsqrt(var + jnp.float32(eps))
    scale = gamma_ref[...] * inv_std                   # (1, c_tile, 1)
    shift = beta_ref[...] - mean * scale               # (1, c_tile, 1)

    y_ref[...] = (x * scale + shift).astype(y_ref.dtype)
    mean_ref[...] = mean
    var_ref[...] = var


def _pick_channel_tile(c, bytes_per_channel, target_bytes):
    """Largest channel tile (multiple of 8, dividing C) fitting target_bytes."""
    if c * bytes_per_channel <= target_bytes:
        return c                                        # whole tensor resident
    best = None
    for d in range(8, c + 1, 8):
        if c % d == 0 and d * bytes_per_channel <= target_bytes:
            best = d
    if best is None:
        # Smallest legal tile; if even this is too big, see TODO above.
        best = 8 if c % 8 == 0 else c
    return best


def batchnorm2d_pallas(x_nchw, gamma, beta, running_mean=None, running_var=None,
                       eps=EPS, momentum=MOMENTUM, max_block_bytes=4 << 20):
    """BatchNorm2d training-mode forward.

    x_nchw: (N, C, H, W) float32.  gamma, beta: (C,).
    Returns y, or (y, new_running_mean, new_running_var) if running stats given.
    """
    n, c, h, w = x_nchw.shape
    hw = h * w

    # NCHW-native: only free contiguous reshapes, no HBM relayout.
    x3 = x_nchw.reshape(n, c, hw)
    g3 = gamma.reshape(1, c, 1).astype(jnp.float32)
    b3 = beta.reshape(1, c, 1).astype(jnp.float32)

    bytes_per_channel = n * hw * x3.dtype.itemsize
    c_tile = _pick_channel_tile(c, bytes_per_channel, max_block_bytes)
    grid = (c // c_tile,)

    x_spec = pl.BlockSpec((n, c_tile, hw), lambda i: (0, i, 0))
    p_spec = pl.BlockSpec((1, c_tile, 1), lambda i: (0, i, 0))

    # Right-sized VMEM limit: ~2x double-buffered in + out blocks, capped.
    block_bytes = n * c_tile * hw * x3.dtype.itemsize
    vmem_limit = int(min(32 << 20, max(4 << 20, 8 * block_bytes)))

    cost = pl.CostEstimate(
        flops=5 * n * c * hw + 10 * c,
        transcendentals=c,
        bytes_accessed=2 * n * c * hw * x3.dtype.itemsize + 6 * c * 4,
    )

    y3, mean, var = pl.pallas_call(
        functools.partial(_bn_fused_kernel,
                          inv_count=1.0 / float(n * hw), eps=float(eps)),
        out_shape=(jax.ShapeDtypeStruct((n, c, hw), x_nchw.dtype),
                   jax.ShapeDtypeStruct((1, c, 1), jnp.float32),
                   jax.ShapeDtypeStruct((1, c, 1), jnp.float32)),
        grid_spec=pltpu.PrefetchScalarGridSpec(
            num_scalar_prefetch=0,
            grid=grid,
            in_specs=[x_spec, p_spec, p_spec],
            out_specs=(x_spec, p_spec, p_spec),
        ),
        compiler_params=pltpu.CompilerParams(
            dimension_semantics=("parallel",),
            vmem_limit_bytes=vmem_limit,
        ),
        cost_estimate=cost,
    )(x3, g3, b3)

    y = y3.reshape(n, c, h, w)

    if running_mean is None or running_var is None:
        return y

    # PyTorch training-mode running-stats momentum update (plain jnp: ~2*C
    # flops; in-place nn.Module buffer mutation has no Pallas equivalent, so
    # the updated buffers are returned functionally).
    mean = mean.reshape(c)
    var = var.reshape(c)
    count = n * hw
    unbias = float(count) / float(max(count - 1, 1))
    new_rm = (1.0 - momentum) * running_mean + momentum * mean
    new_rv = (1.0 - momentum) * running_var + momentum * (var * unbias)
    return y, new_rm, new_rv


def _reference_bn(x, gamma, beta, eps=EPS):
    # Pure-JAX reference of PyTorch BatchNorm2d training-mode forward.
    mean = jnp.mean(x, axis=(0, 2, 3), keepdims=True)
    var = jnp.mean((x - mean) ** 2, axis=(0, 2, 3), keepdims=True)
    xhat = (x - mean) * jax.lax.rsqrt(var + eps)
    return xhat * gamma.reshape(1, -1, 1, 1) + beta.reshape(1, -1, 1, 1)


if __name__ == "__main__":
    key = jax.random.PRNGKey(0)
    kx, kg, kb = jax.random.split(key, 3)

    # Matches the PyTorch module's input x67 = randn(1, 64, 14, 14).
    N, C, H, W = 1, 64, 14, 14
    x = jax.random.normal(kx, (N, C, H, W), dtype=jnp.float32)

    # Non-trivial affine params to exercise the scale/shift path.
    gamma = 1.0 + 0.1 * jax.random.normal(kg, (C,), dtype=jnp.float32)
    beta = 0.1 * jax.random.normal(kb, (C,), dtype=jnp.float32)
    running_mean = jnp.zeros((C,), jnp.float32)
    running_var = jnp.ones((C,), jnp.float32)

    y, new_rm, new_rv = batchnorm2d_pallas(x, gamma, beta, running_mean,
                                           running_var)
    y = jax.block_until_ready(y)

    y_ref = _reference_bn(x, gamma, beta)
    assert y.shape == (N, C, H, W)
    assert jnp.allclose(y, y_ref, atol=1e-4, rtol=1e-4), "y mismatch vs ref"

    # Reference running-stats update (PyTorch uses unbiased var here).
    bm = jnp.mean(x, axis=(0, 2, 3))
    bv = jnp.var(x, axis=(0, 2, 3))
    count = N * H * W
    rm_ref = (1.0 - MOMENTUM) * running_mean + MOMENTUM * bm
    rv_ref = (1.0 - MOMENTUM) * running_var + MOMENTUM * (bv * count / (count - 1))
    assert jnp.allclose(new_rm, rm_ref, atol=1e-5, rtol=1e-5), "running_mean mismatch"
    assert jnp.allclose(new_rv, rv_ref, atol=1e-5, rtol=1e-5), "running_var mismatch"

    # Also exercise the multi-tile (grid > 1, channel-tiled, parallel) path by
    # forcing a tiny per-block budget on the same input.
    y_tiled = jax.block_until_ready(
        batchnorm2d_pallas(x, gamma, beta, max_block_bytes=8 * H * W * 4))
    assert jnp.allclose(y_tiled, y_ref, atol=1e-4, rtol=1e-4), "tiled path mismatch"

    print("KERNEL_OK")
</pallas_src>

<mosaic_0001>
module attributes {stable_mosaic.version = 11 : i64} {
  func.func @_bn_fused_kernel(%arg0: i32, %arg1: memref<1x64x196xf32, #tpu.memory_space<vmem>>, %arg2: memref<1x64x1xf32, #tpu.memory_space<vmem>>, %arg3: memref<1x64x1xf32, #tpu.memory_space<vmem>>, %arg4: memref<1x64x196xf32, #tpu.memory_space<vmem>>, %arg5: memref<1x64x1xf32, #tpu.memory_space<vmem>>, %arg6: memref<1x64x1xf32, #tpu.memory_space<vmem>>) attributes {dimension_semantics = [#tpu.dimension_semantics<parallel>], iteration_bounds = array<i64: 1>, scalar_prefetch = 0 : i64, scratch_operands = 0 : i64, tpu.core_type = #tpu.core_type<tc>, window_params = [{transform_indices = @transform_0, window_bounds = array<i64: 1, 64, 196>}, {transform_indices = @transform_1, window_bounds = array<i64: 1, 64, 1>}, {transform_indices = @transform_2, window_bounds = array<i64: 1, 64, 1>}, {transform_indices = @transform_3, window_bounds = array<i64: 1, 64, 196>}, {transform_indices = @transform_4, window_bounds = array<i64: 1, 64, 1>}, {transform_indices = @transform_5, window_bounds = array<i64: 1, 64, 1>}]} {
    %c0 = arith.constant 0 : index
    %c0_0 = arith.constant 0 : index
    %c0_1 = arith.constant 0 : index
    %0 = vector.load %arg1[%c0, %c0_0, %c0_1] : memref<1x64x196xf32, #tpu.memory_space<vmem>>, vector<1x64x196xf32>
    %cst = arith.constant dense<0.000000e+00> : vector<1x64xf32>
    %1 = vector.multi_reduction <add>, %0, %cst [2] : vector<1x64x196xf32> to vector<1x64xf32>
    %2 = vector.shape_cast %1 : vector<1x64xf32> to vector<1x64x1xf32>
    %3 = arith.mulf %0, %0 : vector<1x64x196xf32>
    %cst_2 = arith.constant dense<0.000000e+00> : vector<1x64xf32>
    %4 = vector.multi_reduction <add>, %3, %cst_2 [2] : vector<1x64x196xf32> to vector<1x64xf32>
    %5 = vector.shape_cast %4 : vector<1x64xf32> to vector<1x64x1xf32>
    %cst_3 = arith.constant dense<0.000000e+00> : vector<64x1xf32>
    %6 = vector.multi_reduction <add>, %2, %cst_3 [0] : vector<1x64x1xf32> to vector<64x1xf32>
    %7 = vector.shape_cast %6 : vector<64x1xf32> to vector<1x64x1xf32>
    %cst_4 = arith.constant dense<0.000000e+00> : vector<64x1xf32>
    %8 = vector.multi_reduction <add>, %5, %cst_4 [0] : vector<1x64x1xf32> to vector<64x1xf32>
    %9 = vector.shape_cast %8 : vector<64x1xf32> to vector<1x64x1xf32>
    %cst_5 = arith.constant 0.00510204071 : f32
    %10 = vector.broadcast %cst_5 : f32 to vector<1x64x1xf32>
    %11 = arith.mulf %7, %10 : vector<1x64x1xf32>
    %cst_6 = arith.constant 0.00510204071 : f32
    %12 = vector.broadcast %cst_6 : f32 to vector<1x64x1xf32>
    %13 = arith.mulf %9, %12 : vector<1x64x1xf32>
    %14 = arith.mulf %11, %11 : vector<1x64x1xf32>
    %15 = arith.subf %13, %14 : vector<1x64x1xf32>
    %cst_7 = arith.constant 0.000000e+00 : f32
    %16 = vector.broadcast %cst_7 : f32 to vector<1x64x1xf32>
    %17 = arith.maximumf %15, %16 : vector<1x64x1xf32>
    %cst_8 = arith.constant 9.99999974E-6 : f32
    %18 = vector.broadcast %cst_8 : f32 to vector<1x64x1xf32>
    %19 = arith.addf %17, %18 : vector<1x64x1xf32>
    %20 = math.rsqrt %19 : vector<1x64x1xf32>
    %c0_9 = arith.constant 0 : index
    %c0_10 = arith.constant 0 : index
    %c0_11 = arith.constant 0 : index
    %21 = vector.load %arg2[%c0_9, %c0_10, %c0_11] : memref<1x64x1xf32, #tpu.memory_space<vmem>>, vector<1x64x1xf32>
    %22 = arith.mulf %21, %20 : vector<1x64x1xf32>
    %c0_12 = arith.constant 0 : index
    %c0_13 = arith.constant 0 : index
    %c0_14 = arith.constant 0 : index
    %23 = vector.load %arg3[%c0_12, %c0_13, %c0_14] : memref<1x64x1xf32, #tpu.memory_space<vmem>>, vector<1x64x1xf32>
    %24 = arith.mulf %11, %22 : vector<1x64x1xf32>
    %25 = arith.subf %23, %24 : vector<1x64x1xf32>
    %26 = vector.broadcast %22 : vector<1x64x1xf32> to vector<1x64x196xf32>
    %27 = arith.mulf %0, %26 : vector<1x64x196xf32>
    %28 = vector.broadcast %25 : vector<1x64x1xf32> to vector<1x64x196xf32>
    %29 = arith.addf %27, %28 : vector<1x64x196xf32>
    %c0_15 = arith.constant 0 : index
    %c0_16 = arith.constant 0 : index
    %c0_17 = arith.constant 0 : index
    %30 = vector.load %arg4[%c0_15, %c0_16, %c0_17] : memref<1x64x196xf32, #tpu.memory_space<vmem>>, vector<1x64x196xf32>
    tpu.vector_store %arg4[%c0_15, %c0_16, %c0_17], %29 {strides = array<i32>} : memref<1x64x196xf32, #tpu.memory_space<vmem>>, vector<1x64x196xf32>,
    %c0_18 = arith.constant 0 : index
    %c0_19 = arith.constant 0 : index
    %c0_20 = arith.constant 0 : index
    %31 = vector.load %arg5[%c0_18, %c0_19, %c0_20] : memref<1x64x1xf32, #tpu.memory_space<vmem>>, vector<1x64x1xf32>
    tpu.vector_store %arg5[%c0_18, %c0_19, %c0_20], %11 {strides = array<i32>} : memref<1x64x1xf32, #tpu.memory_space<vmem>>, vector<1x64x1xf32>,
    %c0_21 = arith.constant 0 : index
    %c0_22 = arith.constant 0 : index
    %c0_23 = arith.constant 0 : index
    %32 = vector.load %arg6[%c0_21, %c0_22, %c0_23] : memref<1x64x1xf32, #tpu.memory_space<vmem>>, vector<1x64x1xf32>
    tpu.vector_store %arg6[%c0_21, %c0_22, %c0_23], %17 {strides = array<i32>} : memref<1x64x1xf32, #tpu.memory_space<vmem>>, vector<1x64x1xf32>,
    return
  }
  func.func @transform_0(%arg0: i32) -> (i32, i32, i32) {
    %c0_i32 = arith.constant 0 : i32
    %c0_i32_0 = arith.constant 0 : i32
    %c0_i32_1 = arith.constant 0 : i32
    return %c0_i32, %arg0, %c0_i32_0 : i32, i32, i32
  }
  func.func @transform_1(%arg0: i32) -> (i32, i32, i32) {
    %c0_i32 = arith.constant 0 : i32
    %c0_i32_0 = arith.constant 0 : i32
    %c0_i32_1 = arith.constant 0 : i32
    return %c0_i32, %arg0, %c0_i32_0 : i32, i32, i32
  }
  func.func @transform_2(%arg0: i32) -> (i32, i32, i32) {
    %c0_i32 = arith.constant 0 : i32
    %c0_i32_0 = arith.constant 0 : i32
    %c0_i32_1 = arith.constant 0 : i32
    return %c0_i32, %arg0, %c0_i32_0 : i32, i32, i32
  }
  func.func @transform_3(%arg0: i32) -> (i32, i32, i32) {
    %c0_i32 = arith.constant 0 : i32
    %c0_i32_0 = arith.constant 0 : i32
    %c0_i32_1 = arith.constant 0 : i32
    return %c0_i32, %arg0, %c0_i32_0 : i32, i32, i32
  }
  func.func @transform_4(%arg0: i32) -> (i32, i32, i32) {
    %c0_i32 = arith.constant 0 : i32
    %c0_i32_0 = arith.constant 0 : i32
    %c0_i32_1 = arith.constant 0 : i32
    return %c0_i32, %arg0, %c0_i32_0 : i32, i32, i32
  }
  func.func @transform_5(%arg0: i32) -> (i32, i32, i32) {
    %c0_i32 = arith.constant 0 : i32
    %c0_i32_0 = arith.constant 0 : i32
    %c0_i32_1 = arith.constant 0 : i32
    return %c0_i32, %arg0, %c0_i32_0 : i32, i32, i32
  }
}

</mosaic_0001>

<bundles_post_ra>
// kernel: tpu_custom_call.1
= control target key start
LH: loop header
LB: loop body
LE: loop exit
PB: predicated region body
PF: predicated region fallthrough
CT: control target
= control target key end

     0   :  { %vm34_vm0 = vcmask 556032   ;;  %s816_s0 = inlined_call_operand.vmem [shape: f32[1,64,196], index: 0, kind: input, shape index: {}]   ;;  %s817_s1 = inlined_call_operand.vmem [shape: f32[1,64,1], index: 1, kind: input, shape index: {}]   ;;  %s818_s2 = inlined_call_operand.vmem [shape: f32[1,64,1], index: 2, kind: input, shape index: {}]   ;;  %s819_s3 = inlined_call_operand.hbm [shape: f32[1,64,196], index: 3, kind: output, shape index: {0}]   ;;  %s820_s4 = inlined_call_operand.vmem [shape: f32[1,64,1], index: 4, kind: output, shape index: {1}]   ;;  %s821_s5 = inlined_call_operand.vmem [shape: f32[1,64,1], index: 5, kind: output, shape index: {2}]  }
   0x1   :  { %v479_v0 = vld [vmem:[%s816_s0 + $0x20] sm:$0xff]  ;;  %v484_v1 = vld [vmem:[%s816_s0 + $0x28] sm:$0xff]  ;;  %v501_v5 = vld [vmem:[%s816_s0 + $0x30] sm:$0xff] }
   0x2   :  { %v489_v2 = vld [vmem:[%s816_s0] sm:$0xff]  ;;  %v43_v3 = vsel %vm34_vm0, %v484_v1, 0.0  ;;  %v496_v4 = vld [vmem:[%s816_s0 + $0x8] sm:$0xff]  ;;  %v506_v6 = vld [vmem:[%s816_s0 + $0x38] sm:$0xff] }
   0x3   :  { %v44_v7 = vadd.f32 %v43_v3, %v479_v0  ;;  %v35_v8 = vsel %vm34_vm0, %v496_v4, 0.0  ;;  %v47_v9 = vsel %vm34_vm0, %v506_v6, 0.0  ;;  %v516_v10 = vld [vmem:[%s816_s0 + $0x10] sm:$0xff]  ;;  %v521_v11 = vld [vmem:[%s816_s0 + $0x18] sm:$0xff]  ;;  %v534_v15 = vld [vmem:[%s816_s0 + $0x48] sm:$0xff] }
   0x4   :  { %v36_v12 = vadd.f32 %v35_v8, %v489_v2  ;;  %v39_v13 = vsel %vm34_vm0, %v521_v11, 0.0  ;;  %v529_v14 = vld [vmem:[%s816_s0 + $0x58] sm:$0xff]  ;;  %v48_v16 = vadd.f32 %v47_v9, %v501_v5  ;;  %v541_v18 = vld [vmem:[%s816_s0 + $0x50] sm:$0xff] }
   0x5   :  { %45 = vadd.xlane.f32.xlu1 %v44_v7  ;;  %v40_v17 = vadd.f32 %v39_v13, %v516_v10  ;;  %v55_v19 = vsel %vm34_vm0, %v529_v14, 0.0 }
   0x6   :  { %37 = vadd.xlane.f32.xlu0 %v36_v12 }
   0x7   :  { %11 = vsyncpa [#allocation3], 0  ;;  %v548_v20 = vld [vmem:[%s816_s0 + $0x40] sm:$0xff]  ;;  %v51_v21 = vsel %vm34_vm0, %v534_v15, 0.0  ;;  %v555_v22 = vld [vmem:[%s816_s0 + $0x78] sm:$0xff]  ;;  %v56_v24 = vadd.f32 %v55_v19, %v541_v18  ;;  %v70_v28 = vmul.f32 %v521_v11, %v521_v11  ;;  %v68_v31 = vmul.f32 %v496_v4, %v496_v4 }
   0x8   :  { %v560_v23 = vld [vmem:[%s816_s0 + $0x68] sm:$0xff]  ;;  %v52_v25 = vadd.f32 %v51_v21, %v548_v20  ;;  %v567_v26 = vld [vmem:[%s816_s0 + $0x70] sm:$0xff]  ;;  %v63_v27 = vsel %vm34_vm0, %v555_v22, 0.0  ;;  %v576_v29 = vld [vmem:[%s816_s0 + $0x60] sm:$0xff]  ;;  %v69_v33 = vmul.f32 %v516_v10, %v516_v10  ;;  %v67_v36 = vmul.f32 %v489_v2, %v489_v2 }
   0x9   :  { %49 = vadd.xlane.f32.xlu1 %v48_v16  ;;  %v59_v30 = vsel %vm34_vm0, %v560_v23, 0.0  ;;  %v64_v32 = vadd.f32 %v63_v27, %v567_v26  ;;  %v87_v35 = vsel %vm34_vm0, %v70_v28, 0.0  ;;  %v74_v37 = vmul.f32 %v506_v6, %v506_v6 }
   0xa   :  { %41 = vadd.xlane.f32.xlu0 %v40_v17  ;;  %v60_v34 = vadd.f32 %v59_v30, %v576_v29  ;;  %v83_v38 = vsel %vm34_vm0, %v68_v31, 0.0  ;;  %v72_v39 = vmul.f32 %v484_v1, %v484_v1  ;;  %v88_v40 = vadd.f32 %v87_v35, %v69_v33 }
   0xb   :  { %v73_v41 = vmul.f32 %v501_v5, %v501_v5  ;;  %v84_v42 = vadd.f32 %v83_v38, %v67_v36  ;;  %v95_v43 = vsel %vm34_vm0, %v74_v37, 0.0  ;;  %v71_v44 = vmul.f32 %v479_v0, %v479_v0 }
   0xc   :  { %v78_v45 = vmul.f32 %v529_v14, %v529_v14  ;;  %v91_v46 = vsel %vm34_vm0, %v72_v39, 0.0  ;;  %v76_v47 = vmul.f32 %v534_v15, %v534_v15  ;;  %v77_v49 = vmul.f32 %v541_v18, %v541_v18 }
   0xd   :  { %57 = vadd.xlane.f32.xlu1 %v56_v24  ;;  %v96_v48 = vadd.f32 %v95_v43, %v73_v41  ;;  %v92_v50 = vadd.f32 %v91_v46, %v71_v44  ;;  %v75_v52 = vmul.f32 %v548_v20, %v548_v20  ;;  %v82_v53 = vmul.f32 %v555_v22, %v555_v22 }
   0xe   :  { %53 = vadd.xlane.f32.xlu0 %v52_v25  ;;  %v103_v51 = vsel %vm34_vm0, %v78_v45, 0.0  ;;  %v99_v54 = vsel %vm34_vm0, %v76_v47, 0.0  ;;  %v80_v55 = vmul.f32 %v560_v23, %v560_v23  ;;  %v81_v57 = vmul.f32 %v567_v26, %v567_v26 }
   0xf   :  { %v104_v56 = vadd.f32 %v103_v51, %v77_v49  ;;  %v100_v58 = vadd.f32 %v99_v54, %v75_v52  ;;  %v111_v59 = vsel %vm34_vm0, %v82_v53, 0.0  ;;  %v79_v60 = vmul.f32 %v576_v29, %v576_v29 }
  0x10   :  { %v107_v61 = vsel %vm34_vm0, %v80_v55, 0.0  ;;  %v112_v62 = vadd.f32 %v111_v59, %v81_v57  ;;  %v442_v3 = vmov 0   ;;  %vm355_vm1 = vcmask 7168  }
  0x11   :  { %65 = vadd.xlane.f32.xlu1 %v64_v32  ;;  %v108_v63 = vadd.f32 %v107_v61, %v79_v60  ;;  %400 = vset.pattern.permute.xlu0 %v442_v3 }
  0x12   :  { %61 = vadd.xlane.f32.xlu0 %v60_v34  ;;  %401 = vset.pattern.permute.xlu1 %v442_v3 }
  0x15   :  { %89 = vadd.xlane.f32.xlu1 %v88_v40 }
  0x16   :  { %85 = vadd.xlane.f32.xlu0 %v84_v42 }
  0x19   :  { %97 = vadd.xlane.f32.xlu1 %v96_v48 }
  0x1a   :  { %93 = vadd.xlane.f32.xlu0 %v92_v50 }
  0x1d   :  { %105 = vadd.xlane.f32.xlu1 %v104_v56 }
  0x1e   :  { %101 = vadd.xlane.f32.xlu0 %v100_v58 }
  0x21   :  { %113 = vadd.xlane.f32.xlu1 %v112_v62 }
  0x22   :  { %109 = vadd.xlane.f32.xlu0 %v108_v63 }
  0x92   :  { %v46_v7 = vpop.xlane.xlu1 %45 }
  0x93   :  { %v620_v8 = vmul.f32 0.0051020407, %v46_v7  ;;  %v38_v9 = vpop.xlane.xlu0 %37 }
  0x94   :  { %v622_v12 = vmul.f32 0.0051020407, %v38_v9 }
  0x95   :  { %358 = vst.msk [vmem:[%s820_s4 + $0x10] sm:$0xff] %vm355_vm1, %v620_v8  ;;  %v149_v47 = vmul.f32 %v620_v8, %v620_v8 }
  0x96   :  { %356 = vst.msk [vmem:[%s820_s4] sm:$0xff] %vm355_vm1, %v622_v12  ;;  %v50_v13 = vpop.xlane.xlu1 %49  ;;  %v147_v37 = vmul.f32 %v622_v12, %v622_v12 }
  0x97   :  { %v634_v16 = vmul.f32 0.0051020407, %v50_v13  ;;  %v42_v17 = vpop.xlane.xlu0 %41 }
  0x98   :  { %v636_v19 = vmul.f32 0.0051020407, %v42_v17 }
  0x99   :  { %359 = vst.msk [vmem:[%s820_s4 + $0x18] sm:$0xff] %vm355_vm1, %v634_v16  ;;  %v150_v43 = vmul.f32 %v634_v16, %v634_v16 }
  0x9a   :  { %357 = vst.msk [vmem:[%s820_s4 + $0x8] sm:$0xff] %vm355_vm1, %v636_v19  ;;  %v58_v21 = vpop.xlane.xlu1 %57  ;;  %v148_v35 = vmul.f32 %v636_v19, %v636_v19 }
  0x9b   :  { %v648_v24 = vmul.f32 0.0051020407, %v58_v21  ;;  %v54_v25 = vpop.xlane.xlu0 %53 }
  0x9c   :  { %v650_v27 = vmul.f32 0.0051020407, %v54_v25 }
  0x9d   :  { %361 = vst.msk [vmem:[%s820_s4 + $0x28] sm:$0xff] %vm355_vm1, %v648_v24  ;;  %v152_v55 = vmul.f32 %v648_v24, %v648_v24 }
  0x9e   :  { %360 = vst.msk [vmem:[%s820_s4 + $0x20] sm:$0xff] %vm355_vm1, %v650_v27  ;;  %v66_v28 = vpop.xlane.xlu1 %65  ;;  %v151_v59 = vmul.f32 %v650_v27, %v650_v27 }
  0x9f   :  { %v662_v30 = vmul.f32 0.0051020407, %v66_v28  ;;  %v62_v31 = vpop.xlane.xlu0 %61 }
  0xa0   :  { %v664_v32 = vmul.f32 0.0051020407, %v62_v31 }
  0xa1   :  { %363 = vst.msk [vmem:[%s820_s4 + $0x38] sm:$0xff] %vm355_vm1, %v662_v30  ;;  %v154_v13 = vmul.f32 %v662_v30, %v662_v30 }
  0xa2   :  { %362 = vst.msk [vmem:[%s820_s4 + $0x30] sm:$0xff] %vm355_vm1, %v664_v32  ;;  %v90_v33 = vpop.xlane.xlu1 %89  ;;  %v153_v28 = vmul.f32 %v664_v32, %v664_v32 }
  0xa3   :  { %v140_v34 = vmul.f32 0.0051020407, %v90_v33  ;;  %v86_v36 = vpop.xlane.xlu0 %85 }
  0xa4   :  { %v139_v38 = vmul.f32 0.0051020407, %v86_v36 }
  0xa5   :  { %v156_v39 = vsub.f32 %v140_v34, %v148_v35 }
  0xa6   :  { %v155_v40 = vsub.f32 %v139_v38, %v147_v37  ;;  %v98_v41 = vpop.xlane.xlu1 %97  ;;  %v188_v38 = vld [vmem:[%s817_s1 + $0x8] sm:$0xff] }
  0xa7   :  { %v164_v42 = vmax.f32 %v156_v39, 0.0  ;;  %v142_v44 = vmul.f32 0.0051020407, %v98_v41  ;;  %v94_v45 = vpop.xlane.xlu0 %93 }
  0xa8   :  { %v163_v46 = vmax.f32 %v155_v40, 0.0  ;;  %v141_v48 = vmul.f32 0.0051020407, %v94_v45  ;;  %v187_v40 = vld [vmem:[%s817_s1] sm:$0xff] }
  0xa9   :  { %v172_v49 = vadd.f32 1e-05, %v164_v42  ;;  %365 = vst.msk [vmem:[%s821_s5 + $0x8] sm:$0xff] %vm355_vm1, %v164_v42  ;;  %v158_v50 = vsub.f32 %v142_v44, %v150_v43 }
  0xaa   :  { %v171_v51 = vadd.f32 1e-05, %v163_v46  ;;  %364 = vst.msk [vmem:[%s821_s5] sm:$0xff] %vm355_vm1, %v163_v46  ;;  %v157_v52 = vsub.f32 %v141_v48, %v149_v47  ;;  %v106_v53 = vpop.xlane.xlu1 %105  ;;  %v204_v46 = vld [vmem:[%s818_s2 + $0x8] sm:$0xff]  ;;  %v190_v47 = vld [vmem:[%s817_s1 + $0x18] sm:$0xff] }
  0xab   :  { %402 = vrsqrt.f32 %v172_v49  ;;  %v166_v54 = vmax.f32 %v158_v50, 0.0  ;;  %v144_v56 = vmul.f32 0.0051020407, %v106_v53  ;;  %v102_v57 = vpop.xlane.xlu0 %101  ;;  %v189_v49 = vld [vmem:[%s817_s1 + $0x10] sm:$0xff] }
  0xac   :  { %404 = vrsqrt.f32 %v171_v51  ;;  %v165_v58 = vmax.f32 %v157_v52, 0.0  ;;  %v143_v60 = vmul.f32 0.0051020407, %v102_v57  ;;  %v192_v57 = vld [vmem:[%s817_s1 + $0x28] sm:$0xff] }
  0xad   :  { %v174_v61 = vadd.f32 1e-05, %v166_v54  ;;  %367 = vst.msk [vmem:[%s821_s5 + $0x18] sm:$0xff] %vm355_vm1, %v166_v54  ;;  %v160_v62 = vsub.f32 %v144_v56, %v152_v55  ;;  %v206_v56 = vld [vmem:[%s818_s2 + $0x18] sm:$0xff] }
  0xae   :  { %v173_v63 = vadd.f32 1e-05, %v165_v58  ;;  %366 = vst.msk [vmem:[%s821_s5 + $0x10] sm:$0xff] %vm355_vm1, %v165_v58  ;;  %v159_v3 = vsub.f32 %v143_v60, %v151_v59  ;;  %v114_v7 = vpop.xlane.xlu1 %113 }
  0xaf   :  { %406 = vrsqrt.f32 %v174_v61  ;;  %v168_v9 = vmax.f32 %v160_v62, 0.0  ;;  %v146_v17 = vmul.f32 0.0051020407, %v114_v7  ;;  %v110_v21 = vpop.xlane.xlu0 %109  ;;  %v208_v61 = vld [vmem:[%s818_s2 + $0x28] sm:$0xff]  ;;  %v194_v62 = vld [vmem:[%s817_s1 + $0x38] sm:$0xff] }
  0xb0   :  { %408 = vrsqrt.f32 %v173_v63  ;;  %v167_v25 = vmax.f32 %v159_v3, 0.0  ;;  %v145_v31 = vmul.f32 0.0051020407, %v110_v21  ;;  %v210_v21 = vld [vmem:[%s818_s2 + $0x38] sm:$0xff] }
  0xb1   :  { %v176_v33 = vadd.f32 1e-05, %v168_v9  ;;  %369 = vst.msk [vmem:[%s821_s5 + $0x28] sm:$0xff] %vm355_vm1, %v168_v9  ;;  %v162_v34 = vsub.f32 %v146_v17, %v154_v13 }
  0xb2   :  { %v175_v35 = vadd.f32 1e-05, %v167_v25  ;;  %368 = vst.msk [vmem:[%s821_s5 + $0x20] sm:$0xff] %vm355_vm1, %v167_v25  ;;  %v161_v36 = vsub.f32 %v145_v31, %v153_v28  ;;  %v193_v31 = vld [vmem:[%s817_s1 + $0x30] sm:$0xff] }
  0xb3   :  { %410 = vrsqrt.f32 %v176_v33  ;;  %v170_v37 = vmax.f32 %v162_v34, 0.0 }
  0xb4   :  { %v169_v39 = vmax.f32 %v161_v36, 0.0  ;;  %412 = vrsqrt.f32 %v175_v35  ;;  %v203_v35 = vld [vmem:[%s818_s2] sm:$0xff] }
  0xb5   :  { %v403_v41 = vpop.eup %402  ;;  %v178_v42 = vadd.f32 1e-05, %v170_v37  ;;  %371 = vst.msk [vmem:[%s821_s5 + $0x38] sm:$0xff] %vm355_vm1, %v170_v37  ;;  %v205_v37 = vld [vmem:[%s818_s2 + $0x10] sm:$0xff] }
  0xb6   :  { %v405_v43 = vpop.eup %404  ;;  %370 = vst.msk [vmem:[%s821_s5 + $0x30] sm:$0xff] %vm355_vm1, %v169_v39  ;;  %v196_v44 = vmul.f32 %v403_v41, %v188_v38  ;;  %v177_v52 = vadd.f32 1e-05, %v169_v39 }
  0xb7   :  { %414 = vrsqrt.f32 %v178_v42  ;;  %v195_v45 = vmul.f32 %v405_v43, %v187_v40 }
  0xb8   :  { %234 = vperm.xlu1 %401, %v196_v44   ;;  %v212_v48 = vmul.f32 %v196_v44, %v636_v19  ;;  %416 = vrsqrt.f32 %v177_v52 }
  0xb9   :  { %v407_v50 = vpop.eup %406  ;;  %229 = vperm.xlu0 %400, %v195_v45   ;;  %v211_v34 = vmul.f32 %v195_v45, %v622_v12  ;;  %v207_v12 = vld [vmem:[%s818_s2 + $0x20] sm:$0xff] }
  0xba   :  { %v409_v51 = vpop.eup %408  ;;  %v220_v53 = vsub.f32 %v204_v46, %v212_v48  ;;  %v198_v54 = vmul.f32 %v407_v50, %v190_v47 }
  0xbb   :  { %v197_v55 = vmul.f32 %v409_v51, %v189_v49 }
  0xbc   :  { %v214_v19 = vmul.f32 %v198_v54, %v634_v16  ;;  %v191_v16 = vld [vmem:[%s817_s1 + $0x20] sm:$0xff] }
  0xbd   :  { %v411_v58 = vpop.eup %410  ;;  %290 = vperm.xlu0 %400, %v220_v53   ;;  %239 = vperm.xlu1 %401, %v197_v55   ;;  %v213_v36 = vmul.f32 %v197_v55, %v620_v8  ;;  %v209_v8 = vld [vmem:[%s818_s2 + $0x30] sm:$0xff]  ;;  %s443_s2 = smov [#allocation2]  }
  0xbe   :  { %v222_v59 = vsub.f32 %v206_v56, %v214_v19  ;;  %v200_v60 = vmul.f32 %v411_v58, %v192_v57  ;;  %v413_v63 = vpop.eup %412  ;;  %s377_s7 = sshll.u32 %s443_s2, 4  ;;  %s378_s7 = int_to_ptr.vmem [resolvable:$true] %s377_s7 }
  0xbf   :  { %v199_v17 = vmul.f32 %v413_v63, %v191_v16  ;;  %v221_v38 = vsub.f32 %v205_v37, %v213_v36  ;;  %s418_s8 = scalar_lea.vmem %s378_s7, 2048  ;;  %p423_p1 = scmp.lt.s32.totalorder %s378_s7, %s378_s7 }
  0xc0   :  { %v216_v3 = vmul.f32 %v200_v60, %v648_v24  ;;  %p419_p0 = scmp.ne.s32.totalorder %s378_s7, %s418_s8  ;;  %p424_p2 = scmp.lt.s32.totalorder %s418_s8, %s418_s8 }
  0xc1   :  { %v415_v7 = vpop.eup %414  ;;  %300 = vperm.xlu0 %400, %v222_v59   ;;  %244 = vperm.xlu1 %401, %v198_v54   ;;  %v215_v39 = vmul.f32 %v199_v17, %v650_v27 }
  0xc2   :  { %v224_v9 = vsub.f32 %v208_v61, %v216_v3  ;;  %v202_v13 = vmul.f32 %v415_v7, %v194_v62  ;;  %v417_v24 = vpop.eup %416  ;;  %p425_p3 = por %p424_p2, %p423_p1 }
  0xc3   :  { %v201_v33 = vmul.f32 %v417_v24, %v193_v31  ;;  %v223_v40 = vsub.f32 %v207_v12, %v215_v39 }
  0xc4   :  { %v218_v25 = vmul.f32 %v202_v13, %v662_v30  ;;  %v219_v30 = vsub.f32 %v203_v35, %v211_v34  ;;  %p426_p4 = pnand %p425_p3, %p419_p0 }
  0xc5   :  { %310 = vperm.xlu0 %400, %v224_v9   ;;  %249 = vperm.xlu1 %401, %v199_v17   ;;  %v217_v41 = vmul.f32 %v201_v33, %v664_v32 }
  0xc6   :  { %v226_v28 = vsub.f32 %v210_v21, %v218_v25 }
  0xc7   :  { %v225_v42 = vsub.f32 %v209_v8, %v217_v41 }
  0xc9   :  { %320 = vperm.xlu0 %400, %v226_v28   ;;  %254 = vperm.xlu1 %401, %v200_v60  }
  0xcd   :  { %259 = vperm.xlu1 %401, %v201_v33  }
  0xd1   :  { %264 = vperm.xlu1 %401, %v202_v13  }
  0xd5   :  { %285 = vperm.xlu1 %401, %v219_v30  }
  0xd9   :  { %295 = vperm.xlu1 %401, %v221_v38  }
  0xdd   :  { %305 = vperm.xlu1 %401, %v223_v40  }
  0xe1   :  { %315 = vperm.xlu1 %401, %v225_v42  }
 0x137   :  { %v235_v43 = vpop.permute.xlu1 %234 }
 0x138   :  { %v230_v44 = vpop.permute.xlu0 %229  ;;  %v269_v45 = vmul.f32 %v235_v43, %v516_v10  ;;  %v270_v27 = vmul.f32 %v235_v43, %v521_v11 }
 0x139   :  { %v267_v62 = vmul.f32 %v230_v44, %v489_v2  ;;  %v268_v63 = vmul.f32 %v230_v44, %v496_v4 }
 0x13c   :  { %v240_v46 = vpop.permute.xlu1 %239  ;;  %v291_v47 = vpop.permute.xlu0 %290 }
 0x13d   :  { %v325_v48 = vadd.f32 %v291_v47, %v269_v45  ;;  %v326_v49 = vadd.f32 %v291_v47, %v270_v27  ;;  %v271_v9 = vmul.f32 %v240_v46, %v479_v0  ;;  %v272_v13 = vmul.f32 %v240_v46, %v484_v1 }
 0x13f   :  { %341 = vst [vmem:[#allocation2 + $0x10] sm:$0xff] %v325_v48  ;;  %342 = vst.msk [vmem:[#allocation2 + $0x18] sm:$0xff] %vm34_vm0, %v326_v49 }
 0x140   :  { %v245_v32 = vpop.permute.xlu1 %244  ;;  %v301_v52 = vpop.permute.xlu0 %300 }
 0x141   :  { %v273_v50 = vmul.f32 %v245_v32, %v501_v5  ;;  %v274_v51 = vmul.f32 %v245_v32, %v506_v6 }
 0x143   :  { %v329_v53 = vadd.f32 %v301_v52, %v273_v50  ;;  %v330_v54 = vadd.f32 %v301_v52, %v274_v51 }
 0x144   :  { %v250_v55 = vpop.permute.xlu1 %249  ;;  %v311_v57 = vpop.permute.xlu0 %310 }
 0x145   :  { %345 = vst [vmem:[#allocation2 + $0x30] sm:$0xff] %v329_v53  ;;  %346 = vst.msk [vmem:[#allocation2 + $0x38] sm:$0xff] %vm34_vm0, %v330_v54  ;;  %v275_v4 = vmul.f32 %v250_v55, %v548_v20  ;;  %v276_v17 = vmul.f32 %v250_v55, %v534_v15 }
 0x148   :  { %v255_v10 = vpop.permute.xlu1 %254  ;;  %v321_v61 = vpop.permute.xlu0 %320 }
 0x149   :  { %v277_v11 = vmul.f32 %v255_v10, %v541_v18  ;;  %v278_v56 = vmul.f32 %v255_v10, %v529_v14 }
 0x14b   :  { %v333_v19 = vadd.f32 %v311_v57, %v277_v11  ;;  %v334_v58 = vadd.f32 %v311_v57, %v278_v56 }
 0x14c   :  { %v260_v59 = vpop.permute.xlu1 %259 }
 0x14d   :  { %349 = vst [vmem:[#allocation2 + $0x50] sm:$0xff] %v333_v19  ;;  %350 = vst.msk [vmem:[#allocation2 + $0x58] sm:$0xff] %vm34_vm0, %v334_v58  ;;  %v279_v0 = vmul.f32 %v260_v59, %v576_v29  ;;  %v280_v1 = vmul.f32 %v260_v59, %v560_v23 }
 0x150   :  { %v265_v5 = vpop.permute.xlu1 %264 }
 0x151   :  { %v281_v6 = vmul.f32 %v265_v5, %v567_v26  ;;  %v282_v60 = vmul.f32 %v265_v5, %v555_v22 }
 0x153   :  { %v337_v18 = vadd.f32 %v321_v61, %v281_v6  ;;  %v338_v3 = vadd.f32 %v321_v61, %v282_v60 }
 0x154   :  { %v286_v14 = vpop.permute.xlu1 %285 }
 0x155   :  { %353 = vst [vmem:[#allocation2 + $0x70] sm:$0xff] %v337_v18  ;;  %354 = vst.msk [vmem:[#allocation2 + $0x78] sm:$0xff] %vm34_vm0, %v338_v3  ;;  %v323_v16 = vadd.f32 %v286_v14, %v267_v62  ;;  %v324_v7 = vadd.f32 %v286_v14, %v268_v63 }
 0x157   :  { %339 = vst [vmem:[#allocation2] sm:$0xff] %v323_v16  ;;  %340 = vst.msk [vmem:[#allocation2 + $0x8] sm:$0xff] %vm34_vm0, %v324_v7 }
 0x158   :  { %v296_v22 = vpop.permute.xlu1 %295 }
 0x159   :  { %v327_v26 = vadd.f32 %v296_v22, %v271_v9  ;;  %v328_v2 = vadd.f32 %v296_v22, %v272_v13 }
 0x15b   :  { %343 = vst [vmem:[#allocation2 + $0x20] sm:$0xff] %v327_v26  ;;  %344 = vst.msk [vmem:[#allocation2 + $0x28] sm:$0xff] %vm34_vm0, %v328_v2 }
 0x15c   :  { %v306_v21 = vpop.permute.xlu1 %305 }
 0x15d   :  { %v331_v25 = vadd.f32 %v306_v21, %v275_v4  ;;  %v332_v28 = vadd.f32 %v306_v21, %v276_v17 }
 0x15f   :  { %347 = vst [vmem:[#allocation2 + $0x40] sm:$0xff] %v331_v25  ;;  %348 = vst.msk [vmem:[#allocation2 + $0x48] sm:$0xff] %vm34_vm0, %v332_v28 }
 0x160   :  { %v316_v24 = vpop.permute.xlu1 %315 }
 0x161   :  { %v335_v20 = vadd.f32 %v316_v24, %v279_v0  ;;  %v336_v31 = vadd.f32 %v316_v24, %v280_v1 }
 0x163   :  { %351 = vst [vmem:[#allocation2 + $0x60] sm:$0xff] %v335_v20  ;;  %352 = vst.msk [vmem:[#allocation2 + $0x68] sm:$0xff] %vm34_vm0, %v336_v31 }
 0x164   :  { %429 = shalt.err (!%p426_p4)
}
 0x165   :  { %s430_s11 = scalar_lea.hbm %s819_s3, 2048 }
 0x166   :  { %p431_p5 = scmp.ne.s32.totalorder %s819_s3, %s430_s11  ;;  %p434_p6 = scmp.lt.u32.totalorder %s430_s11, %s819_s3 }
 0x168   :  { %p436_p7 = pnand %p434_p6, %p431_p5 }
 0x16a   :  { %439 = shalt.err (!%p436_p7)
}
 0x16b   :  { %s444_s4 = smov 256   ;;  %s445_s15 = smov 16  }
 0x16c   :  { %383 = dma.vmem_to_hbm [thread:$0]  %s378_s7, 2048, %s819_s3, [#allocation3], %s444_s4, %s444_s4, %s445_s15  }
 0x16d   :  { %440 = dma.done.wait [#allocation3], 2048  }
 0x16e   :  { %441 = vsyncadd [#allocation3], 4294965248 }
 0x16f   :  { %395 = vsyncpa [#allocation3], 1 }

</bundles_post_ra>
